<compile_context>
chip_gen: v7x
topology: tpu7x:2x2x1
jax: 0.10.0
libtpu: 0.0.40
codegen_flags: <defaults>
</compile_context>

<pallas_src>
import jax
import jax.numpy as jnp
from jax import lax
from jax.experimental import pallas as pl
from jax.experimental.pallas import tpu as pltpu


def mlp_kernel(x_ref, w1t_ref, b1_ref, w2_ref, b2_ref, o_ref):
    """One batch tile: o = relu(x @ W1^T + b1) @ W2^T + b2.

    x_ref   : (TILE_B, n_feature)   f32 (tiled over batch)
    w1t_ref : (n_feature, n_hidden) f32 (hidden weight, (in, out) layout, resident)
    b1_ref  : (1, n_hidden)         f32 (resident)
    w2_ref  : (n_output, n_hidden)  f32 (PyTorch layout, consumed directly, resident)
    b2_ref  : (1, n_output)         f32 (resident)
    o_ref   : (TILE_B, n_output)
    """
    n_feat = x_ref.shape[1]

    # ---- Layer 1: x @ W1^T + b1 ------------------------------------------
    if n_feat <= 16:
        # Tiny contraction (n_feature=2): a [B,2]x[2,H] matmul uses <1% of an
        # MXU pass and pays MXU push/pop latency for nothing.  Do it on the
        # VPU as n_feat broadcast-multiply-adds (static unroll).
        h = b1_ref[...]                                   # (1, n_hidden), broadcasts
        for f in range(n_feat):
            h = h + x_ref[:, f:f + 1] * w1t_ref[f:f + 1, :]
    else:
        h = jnp.dot(x_ref[...], w1t_ref[...],
                    preferred_element_type=jnp.float32) + b1_ref[...]

    h = jnp.maximum(h, 0.0)                               # ReLU in f32 on the VPU

    # ---- Layer 2: h @ W2^T + b2 --------------------------------------------
    # Contract dim 1 of h with dim 1 of W2 so the MXU consumes the PyTorch
    # (out, in) weight layout directly (no transpose anywhere for W2).
    y = lax.dot_general(h, w2_ref[...],
                        dimension_numbers=(((1,), (1,)), ((), ())),
                        preferred_element_type=jnp.float32)
    # NOTE: n_output=2 -> masked (non-lane-dense) stores; acceptable at these
    # sizes (padding the output to 128 lanes would 64x the HBM writeback).
    o_ref[...] = (y + b2_ref[...]).astype(o_ref.dtype)


def net_forward(x, w1, b1, w2, b2, *, tile_b=512):
    """x: [B, n_feature]; w1: [n_hidden, n_feature]; b1: [n_hidden];
       w2: [n_output, n_hidden]; b2: [n_output]  (PyTorch Linear convention)."""
    B, n_feature = x.shape
    n_hidden = w1.shape[0]
    n_output = w2.shape[0]

    # W1 is transposed ONCE to (in, out) so the kernel's VPU path can broadcast
    # its rows; in a real training loop store the parameter in this layout so
    # no per-step transpose op runs.  W2 stays in PyTorch layout.
    w1_t = jnp.transpose(w1)                  # (n_feature, n_hidden)
    b1_2d = b1.reshape(1, n_hidden)
    b2_2d = b2.reshape(1, n_output)

    # Batch tiling: whole batch as one tile when it fits, otherwise tile at
    # `tile_b` rows and zero-pad the batch to a multiple of it.
    if B <= tile_b:
        tb = B
        b_pad = B
        x_in = x
    else:
        tb = tile_b
        b_pad = pl.cdiv(B, tb) * tb
        x_in = jnp.pad(x, ((0, b_pad - B), (0, 0))) if b_pad != B else x

    const = lambda i: (0, 0)                  # weights/biases stay resident

    out = pl.pallas_call(
        mlp_kernel,
        out_shape=jax.ShapeDtypeStruct((b_pad, n_output), x.dtype),
        grid=(b_pad // tb,),
        in_specs=[
            pl.BlockSpec((tb, n_feature), lambda i: (i, 0)),   # x: tiled over batch
            pl.BlockSpec((n_feature, n_hidden), const),        # W1^T resident
            pl.BlockSpec((1, n_hidden), const),                # b1 resident
            pl.BlockSpec((n_output, n_hidden), const),         # W2 resident
            pl.BlockSpec((1, n_output), const),                # b2 resident
        ],
        out_specs=pl.BlockSpec((tb, n_output), lambda i: (i, 0)),
        compiler_params=pltpu.CompilerParams(
            # batch tiles are independent -> megacore-shardable on v7x
            dimension_semantics=("parallel",),
            # explicit budget with headroom vs v7x's 64 MiB physical VMEM
            vmem_limit_bytes=32 * 1024 * 1024,
        ),
    )(x_in, w1_t, b1_2d, w2, b2_2d)

    return out[:B] if b_pad != B else out


if __name__ == "__main__":
    key = jax.random.PRNGKey(0)
    n_feature, n_hidden, n_output = 2, 32, 2
    batch = 8

    k_xp, k_xn, k_w1, k_b1, k_w2, k_b2 = jax.random.split(key, 6)
    # Mimic the torch data: two clusters around +2 and -2 (independent noise).
    x_pos = 2.0 + jax.random.normal(k_xp, (batch // 2, n_feature), dtype=jnp.float32)
    x_neg = -2.0 + jax.random.normal(k_xn, (batch // 2, n_feature), dtype=jnp.float32)
    x = jnp.concatenate([x_pos, x_neg], axis=0)

    # Deterministic parameter init (uniform, like torch.nn.Linear's scale).
    w1 = jax.random.uniform(k_w1, (n_hidden, n_feature), jnp.float32,
                            -1.0 / n_feature ** 0.5, 1.0 / n_feature ** 0.5)
    b1 = jax.random.uniform(k_b1, (n_hidden,), jnp.float32,
                            -1.0 / n_feature ** 0.5, 1.0 / n_feature ** 0.5)
    w2 = jax.random.uniform(k_w2, (n_output, n_hidden), jnp.float32,
                            -1.0 / n_hidden ** 0.5, 1.0 / n_hidden ** 0.5)
    b2 = jax.random.uniform(k_b2, (n_output,), jnp.float32,
                            -1.0 / n_hidden ** 0.5, 1.0 / n_hidden ** 0.5)

    out = jax.block_until_ready(net_forward(x, w1, b1, w2, b2))

    # Reference check in plain JAX (same math as the PyTorch forward).
    ref = jnp.maximum(x @ w1.T + b1, 0.0) @ w2.T + b2
    assert out.shape == (batch, n_output)
    assert jnp.allclose(out, ref, atol=1e-5), "mismatch vs reference"
    print("KERNEL_OK")
</pallas_src>

<mosaic_0001>
module attributes {stable_mosaic.version = 11 : i64} {
  func.func @mlp_kernel(%arg0: i32, %arg1: memref<8x2xf32, #tpu.memory_space<vmem>>, %arg2: memref<2x32xf32, #tpu.memory_space<vmem>>, %arg3: memref<1x32xf32, #tpu.memory_space<vmem>>, %arg4: memref<2x32xf32, #tpu.memory_space<vmem>>, %arg5: memref<1x2xf32, #tpu.memory_space<vmem>>, %arg6: memref<8x2xf32, #tpu.memory_space<vmem>>) attributes {dimension_semantics = [#tpu.dimension_semantics<parallel>], iteration_bounds = array<i64: 1>, scalar_prefetch = 0 : i64, scratch_operands = 0 : i64, tpu.core_type = #tpu.core_type<tc>, window_params = [{transform_indices = @transform_0, window_bounds = array<i64: 8, 2>}, {pipeline_mode = #tpu.pipeline_mode<synchronous>, transform_indices = @transform_1, window_bounds = array<i64: 2, 32>}, {pipeline_mode = #tpu.pipeline_mode<synchronous>, transform_indices = @transform_2, window_bounds = array<i64: 1, 32>}, {pipeline_mode = #tpu.pipeline_mode<synchronous>, transform_indices = @transform_3, window_bounds = array<i64: 2, 32>}, {pipeline_mode = #tpu.pipeline_mode<synchronous>, transform_indices = @transform_4, window_bounds = array<i64: 1, 2>}, {transform_indices = @transform_5, window_bounds = array<i64: 8, 2>}]} {
    %c0 = arith.constant 0 : index
    %c0_0 = arith.constant 0 : index
    %0 = vector.load %arg3[%c0, %c0_0] : memref<1x32xf32, #tpu.memory_space<vmem>>, vector<1x32xf32>
    %c0_1 = arith.constant 0 : index
    %c0_2 = arith.constant 0 : index
    %1 = vector.load %arg1[%c0_1, %c0_2] : memref<8x2xf32, #tpu.memory_space<vmem>>, vector<8x1xf32>
    %c0_3 = arith.constant 0 : index
    %c0_4 = arith.constant 0 : index
    %2 = vector.load %arg2[%c0_3, %c0_4] : memref<2x32xf32, #tpu.memory_space<vmem>>, vector<1x32xf32>
    %3 = vector.broadcast %1 : vector<8x1xf32> to vector<8x32xf32>
    %4 = vector.broadcast %2 : vector<1x32xf32> to vector<8x32xf32>
    %5 = arith.mulf %3, %4 : vector<8x32xf32>
    %6 = vector.broadcast %0 : vector<1x32xf32> to vector<8x32xf32>
    %7 = arith.addf %6, %5 : vector<8x32xf32>
    %c0_5 = arith.constant 0 : index
    %c1 = arith.constant 1 : index
    %8 = vector.load %arg1[%c0_5, %c1] : memref<8x2xf32, #tpu.memory_space<vmem>>, vector<8x1xf32>
    %c1_6 = arith.constant 1 : index
    %c0_7 = arith.constant 0 : index
    %9 = vector.load %arg2[%c1_6, %c0_7] : memref<2x32xf32, #tpu.memory_space<vmem>>, vector<1x32xf32>
    %10 = vector.broadcast %8 : vector<8x1xf32> to vector<8x32xf32>
    %11 = vector.broadcast %9 : vector<1x32xf32> to vector<8x32xf32>
    %12 = arith.mulf %10, %11 : vector<8x32xf32>
    %13 = arith.addf %7, %12 : vector<8x32xf32>
    %cst = arith.constant 0.000000e+00 : f32
    %14 = vector.broadcast %cst : f32 to vector<8x32xf32>
    %15 = arith.maximumf %13, %14 : vector<8x32xf32>
    %c0_8 = arith.constant 0 : index
    %c0_9 = arith.constant 0 : index
    %16 = vector.load %arg4[%c0_8, %c0_9] : memref<2x32xf32, #tpu.memory_space<vmem>>, vector<2x32xf32>
    %cst_10 = arith.constant dense<0.000000e+00> : vector<8x2xf32>
    %17 = tpu.matmul %15, %16, %cst_10 {dimension_numbers = #tpu.dot_dimension_numbers<[1], [1], [0], [0], [0, 0, 1, 0], [], []>} : vector<8x32xf32>, vector<2x32xf32>, vector<8x2xf32> -> vector<8x2xf32>
    %c0_11 = arith.constant 0 : index
    %c0_12 = arith.constant 0 : index
    %18 = vector.load %arg5[%c0_11, %c0_12] : memref<1x2xf32, #tpu.memory_space<vmem>>, vector<1x2xf32>
    %19 = vector.broadcast %18 : vector<1x2xf32> to vector<8x2xf32>
    %20 = arith.addf %17, %19 : vector<8x2xf32>
    %c0_13 = arith.constant 0 : index
    %c0_14 = arith.constant 0 : index
    %21 = vector.load %arg6[%c0_13, %c0_14] : memref<8x2xf32, #tpu.memory_space<vmem>>, vector<8x2xf32>
    tpu.vector_store %arg6[%c0_13, %c0_14], %20 {strides = array<i32>} : memref<8x2xf32, #tpu.memory_space<vmem>>, vector<8x2xf32>,
    return
  }
  func.func @transform_0(%arg0: i32) -> (i32, i32) {
    %c0_i32 = arith.constant 0 : i32
    %c0_i32_0 = arith.constant 0 : i32
    return %arg0, %c0_i32 : i32, i32
  }
  func.func @transform_1(%arg0: i32) -> (i32, i32) {
    %c0_i32 = arith.constant 0 : i32
    %c0_i32_0 = arith.constant 0 : i32
    %c0_i32_1 = arith.constant 0 : i32
    return %c0_i32, %c0_i32_0 : i32, i32
  }
  func.func @transform_2(%arg0: i32) -> (i32, i32) {
    %c0_i32 = arith.constant 0 : i32
    %c0_i32_0 = arith.constant 0 : i32
    %c0_i32_1 = arith.constant 0 : i32
    return %c0_i32, %c0_i32_0 : i32, i32
  }
  func.func @transform_3(%arg0: i32) -> (i32, i32) {
    %c0_i32 = arith.constant 0 : i32
    %c0_i32_0 = arith.constant 0 : i32
    %c0_i32_1 = arith.constant 0 : i32
    return %c0_i32, %c0_i32_0 : i32, i32
  }
  func.func @transform_4(%arg0: i32) -> (i32, i32) {
    %c0_i32 = arith.constant 0 : i32
    %c0_i32_0 = arith.constant 0 : i32
    %c0_i32_1 = arith.constant 0 : i32
    return %c0_i32, %c0_i32_0 : i32, i32
  }
  func.func @transform_5(%arg0: i32) -> (i32, i32) {
    %c0_i32 = arith.constant 0 : i32
    %c0_i32_0 = arith.constant 0 : i32
    return %arg0, %c0_i32 : i32, i32
  }
}

</mosaic_0001>

<bundles_post_ra>
// kernel: tpu_custom_call.1
= control target key start
LH: loop header
LB: loop body
LE: loop exit
PB: predicated region body
PF: predicated region fallthrough
CT: control target
= control target key end

     0   :  { %v162_v0 = vmov 0   ;;  %v163_v2 = vmov 1   ;;  %v164_v3 = vmov 0.0   ;;  %vm60_vm0 = vcmask 261120   ;;  %s219_s0 = inlined_call_operand.vmem [shape: f32[8,2], index: 0, kind: input, shape index: {}]   ;;  %s220_s3 = inlined_call_operand.vmem [shape: f32[2,32], index: 3, kind: input, shape index: {}]   ;;  %s221_s1 = inlined_call_operand.vmem [shape: f32[2,32], index: 1, kind: input, shape index: {}]   ;;  %s222_s2 = inlined_call_operand.vmem [shape: f32[1,32], index: 2, kind: input, shape index: {}]   ;;  %s223_s4 = inlined_call_operand.vmem [shape: f32[1,2], index: 4, kind: input, shape index: {}]   ;;  %s224_s5 = inlined_call_operand.vmem [shape: f32[8,2], index: 5, kind: output, shape index: {}]  }
   0x1   :  { %160 = vset.pattern.permute.xlu0 %v162_v0  ;;  %v21_v1 = vld [vmem:[%s219_s0] sm:$0xff]  ;;  %151 = vmatprep.subr.mxu0 %v164_v3  ;;  %vm165_vm1 = vmmov 0   ;;  %vm137_vm2 = vcmask 15360  }
   0x2   :  { %25 = vperm.xlu0 %160, %v21_v1   ;;  %v52_v4 = vld [vmem:[%s220_s3] sm:$0x3]  ;;  %153 = vmatprep.mubr.msk.f32.mxu0 %vm165_vm1, %v164_v3 }
   0x3   :  { %152 = vmatpush3.xpose.msk.msra.mxu0 %vm60_vm0, %v52_v4  ;;  %v143_v5 = vld [vmem:[%s221_s1] ss:$0 sm:$0xff]  ;;  %v145_v9 = vld [vmem:[%s221_s1 + $0x1] ss:$0 sm:$0xff] }
   0x4   :  { %v144_v8 = vld [vmem:[%s222_s2] ss:$0 sm:$0xff] }
   0x5   :  { %v146_v15 = vld [vmem:[%s223_s4] ss:$0 sm:$0xff] }
   0x6   :  { %161 = vset.pattern.permute.xlu0 %v163_v2 }
   0x7   :  { %42 = vperm.xlu0 %161, %v21_v1  }
  0x81   :  { %v26_v6 = vpop.permute.xlu0 %25 }
  0x82   :  { %v32_v7 = vmul.f32 %v143_v5, %v26_v6 }
  0x84   :  { %v39_v11 = vadd.f32 %v144_v8, %v32_v7 }
  0x86   :  { %v43_v10 = vpop.permute.xlu0 %42 }
  0x87   :  { %v49_v12 = vmul.f32 %v145_v9, %v43_v10 }
  0x89   :  { %v50_v13 = vadd.f32 %v49_v12, %v39_v11 }
  0x8b   :  { %v51_v14 = vmax.f32 %v50_v13, 0.0 }
  0x8d   :  { %154 = vmatmul.mubr.msk.f32.vlgmr.msra.gmra.mrb[0].mxu0 %vm60_vm0, %v51_v14 }
 0x160   :  { %v133_v16 = vpop.f32.mrb[0].mxu0 }
 0x161   :  { %v134_v17 = vadd.f32 %v146_v15, %v133_v16  ;;  %v155_v18 = vpop.f32.mrb[1].mxu0 }
 0x163   :  { %138 = vst.msk [vmem:[%s224_s5] sm:$0xff] %vm137_vm2, %v134_v17 }

</bundles_post_ra>
